<compile_context>
chip_gen: v7x
topology: tpu7x:2x2x1
jax: 0.10.0
libtpu: 0.0.40
codegen_flags: <defaults>
</compile_context>

<pallas_src>
import functools

import jax
import jax.numpy as jnp
from jax.experimental import pallas as pl
from jax.experimental.pallas import tpu as pltpu


def _round_up(x, m):
    return (x + m - 1) // m * m


def _attention_kernel(
    x_ref,         # (TB, C_in, THW)   streamed NCHW activation block (HW on lanes)
    w_fc_ref,      # (C_in, A)         fc weight * bn_scale / (H*W)
    bn_shift_ref,  # (1, A)
    w_heads_ref,   # (A, TOTAL_PAD)    [channel | filter | spatial | kernel | 0-pad] / T
    b_heads_ref,   # (1, TOTAL_PAD)
    out_ref,       # (TB, TOTAL_PAD)   packed attention output
    acc_ref,       # (TB, C_in, CW)    VMEM scratch: per-lane partial spatial sums
    *,
    hw,            # true H*W (static)
    thw,           # spatial block width (static)
    cw,            # chunk width: 128, or thw when thw < 128
    k_start,
    k_num,
):
    s = pl.program_id(1)

    @pl.when(s == 0)
    def _():
        acc_ref[...] = jnp.zeros_like(acc_ref)

    n_chunks = thw // cw
    need_mask = (hw % thw) != 0   # static: only emit the select path if required

    # AdaptiveAvgPool2d(1) as a streamed sum: static lane-aligned 128-wide chunk
    # adds (pure VALU work, stays well under the DMA on every generation).  The
    # cross-lane reduce is deferred to the last step below.
    acc = acc_ref[...]
    if need_mask:
        lane = jax.lax.broadcasted_iota(jnp.int32, acc.shape, 2)   # hoisted once
        rem = hw - s * thw                                         # valid lanes left
    for j in range(n_chunks):
        chunk = x_ref[:, :, j * cw:(j + 1) * cw].astype(jnp.float32)
        if need_mask:
            chunk = jnp.where(lane < rem - j * cw, chunk, 0.0)
        acc = acc + chunk
    acc_ref[...] = acc

    @pl.when(s == pl.num_programs(1) - 1)
    def _():
        # One small XLU lane-reduce per batch block.
        pooled = jnp.sum(acc_ref[...], axis=-1)                    # (TB, C_in)

        # fc (no bias) + folded BN + ReLU.  bn_scale and 1/(H*W) already live in
        # w_fc, so pooled (raw sum) @ w_fc == bn_scale * fc(mean).
        h = jnp.dot(pooled, w_fc_ref[...], preferred_element_type=jnp.float32)
        h = jnp.maximum(h + bn_shift_ref[...], 0.0)                # (TB, A)

        # Single fused head matmul; 1/temperature folded into weights/biases.
        logits = jnp.dot(h, w_heads_ref[...],
                         preferred_element_type=jnp.float32) + b_heads_ref[...]

        # Lane mask selecting the kernel-attention segment (softmax); everything
        # else (channel / filter / spatial segments and the zero padding) gets a
        # plain sigmoid.  Whole-vreg ops: no sub-vreg slicing / concatenation.
        lane2 = jax.lax.broadcasted_iota(jnp.int32, logits.shape, 1)
        in_k = jnp.logical_and(lane2 >= k_start, lane2 < k_start + k_num)

        klog = jnp.where(in_k, logits, -jnp.inf)
        kmax = jnp.max(klog, axis=-1, keepdims=True)
        ke = jnp.where(in_k, jnp.exp(klog - kmax), 0.0)
        ksum = jnp.sum(ke, axis=-1, keepdims=True)
        inv = pl.reciprocal(ksum, approx=True)      # EUP slot (otherwise idle)
        inv = inv * (2.0 - ksum * inv)              # one Newton step -> ~f32 acc
        out_ref[...] = jnp.where(in_k, ke * inv, jax.nn.sigmoid(logits))


def odconv_attention(x, params, *, kernel_size, kernel_num, temperature=1.0,
                     bn_eps=1e-5, block_hw=None, block_b=None,
                     target_block_bytes=8 * 1024 * 1024):
    """x: (B, C_in, H, W) float32/bfloat16 (NCHW, streamed as-is). Returns the 4
    attention tensors with exactly the PyTorch output shapes."""
    B, C_in, H, W = x.shape
    HW = H * W
    A = params["w_fc"].shape[1]
    C_out = params["w_filter"].shape[1]
    KK = kernel_size * kernel_size
    K = kernel_num

    # ---- host/XLA-side static weight folding (one-time under jit) ----
    bn_scale = params["bn_gamma"] / jnp.sqrt(params["bn_var"] + bn_eps)
    bn_shift = (params["bn_beta"] - params["bn_mean"] * bn_scale).astype(jnp.float32)
    # Fold BN scale and the 1/(H*W) mean divisor into the fc weight.
    w_fc = (params["w_fc"] * bn_scale[None, :] / float(HW)).astype(jnp.float32)

    inv_t = 1.0 / float(temperature)
    total = C_in + C_out + KK + K
    total_pad = _round_up(total, 128)          # lane-dense packed output store
    w_heads = jnp.concatenate(
        [params["w_channel"], params["w_filter"],
         params["w_spatial"], params["w_kernel"]], axis=1) * inv_t
    b_heads = jnp.concatenate(
        [params["b_channel"], params["b_filter"],
         params["b_spatial"], params["b_kernel"]], axis=0) * inv_t
    w_heads = jnp.pad(w_heads, ((0, 0), (0, total_pad - total))).astype(jnp.float32)
    b_heads = jnp.pad(b_heads, (0, total_pad - total)).astype(jnp.float32)
    b_heads = b_heads.reshape(1, total_pad)

    # ---- x stays NCHW: only a free reshape merging (H, W) -> HW ----
    x_l = x.reshape(B, C_in, HW)
    dtype_bytes = x.dtype.itemsize

    # Batch tiling: blocks must be a multiple of 8 sublanes or the full dim.
    # B >= 16 gives >= 2 batch blocks so the "parallel" axis shards across v7x's
    # two TensorCores; partial last batch blocks are handled by Pallas boundary
    # semantics (out-of-range writes dropped, garbage rows are row-independent).
    if block_b is not None:
        tb = block_b
    elif B <= 8:
        tb = B
    else:
        tb = 8

    # Spatial tiling: multiple of 128 lanes sized by bytes (~target_block_bytes
    # per x buffer), capped at 32 chunks to bound the unrolled add loop, or the
    # full HW when HW < 128.  No padding of x: a partial last block is masked.
    if block_hw is not None:
        thw = block_hw
    elif HW < 128:
        thw = HW
    else:
        cap = max(128, (target_block_bytes // (tb * C_in * dtype_bytes)) // 128 * 128)
        cap = min(cap, 32 * 128)
        thw = min(cap, (HW // 128) * 128)
    cw = 128 if thw >= 128 else thw

    grid = (pl.cdiv(B, tb), pl.cdiv(HW, thw))   # spatial reduction axis last

    kernel = functools.partial(_attention_kernel, hw=HW, thw=thw, cw=cw,
                               k_start=C_in + C_out + KK, k_num=K)

    # Explicit scoped-VMEM budget: 2 pipeline buffers per input + out + scratch.
    # (v5e default scoped limit is only 16 MiB; v7x physical VMEM is 64 MiB.)
    x_block_bytes = tb * C_in * thw * dtype_bytes
    weight_bytes = 4 * (C_in * A + A + A * total_pad + total_pad)
    vmem_need = (2 * (x_block_bytes + weight_bytes + tb * total_pad * 4)
                 + tb * C_in * cw * 4)
    vmem_limit = int(min(48 * 1024 * 1024,
                         max(24 * 1024 * 1024, int(vmem_need * 1.25))))

    cost = pl.CostEstimate(
        flops=int(B * HW * C_in + 2 * B * C_in * A + 2 * B * A * total_pad),
        transcendentals=int(B * total_pad),
        bytes_accessed=int(B * C_in * HW * dtype_bytes
                           + 4 * (C_in * A + A * total_pad + 2 * total_pad
                                  + B * total_pad)),
    )

    packed = pl.pallas_call(
        kernel,
        out_shape=jax.ShapeDtypeStruct((B, total_pad), jnp.float32),
        grid_spec=pltpu.PrefetchScalarGridSpec(
            num_scalar_prefetch=0,
            grid=grid,
            in_specs=[
                pl.BlockSpec((tb, C_in, thw), lambda b, s: (b, 0, s)),   # streamed
                pl.BlockSpec((C_in, A), lambda b, s: (0, 0)),            # resident
                pl.BlockSpec((1, A), lambda b, s: (0, 0)),
                pl.BlockSpec((A, total_pad), lambda b, s: (0, 0)),
                pl.BlockSpec((1, total_pad), lambda b, s: (0, 0)),
            ],
            out_specs=pl.BlockSpec((tb, total_pad), lambda b, s: (b, 0)),
            scratch_shapes=[pltpu.VMEM((tb, C_in, cw), jnp.float32)],
        ),
        compiler_params=pltpu.CompilerParams(
            dimension_semantics=("parallel", "arbitrary"),
            vmem_limit_bytes=vmem_limit),
        cost_estimate=cost,
    )(x_l, w_fc, bn_shift.reshape(1, A), w_heads, b_heads)

    ch = packed[:, :C_in].reshape(B, C_in, 1, 1)
    fl = packed[:, C_in:C_in + C_out].reshape(B, C_out, 1, 1)
    sp = packed[:, C_in + C_out:C_in + C_out + KK].reshape(
        B, 1, 1, 1, kernel_size, kernel_size)
    kn = packed[:, C_in + C_out + KK:total].reshape(B, K, 1, 1, 1, 1)
    return ch, fl, sp, kn


def _make_params(key, in_channels, out_channels, kernel_size, kernel_num,
                 reduction=0.0625, min_channels=16):
    """Deterministic parameter init mirroring the module's __init__
    (kaiming_normal_ fan_out / relu for conv weights, zero biases, BN gamma=1,
    beta=0, running stats 0/1).  Conv weights stored pre-transposed (in, out)."""
    A = max(int(in_channels * reduction), min_channels)
    KK = kernel_size * kernel_size
    keys = jax.random.split(key, 5)

    def kaiming(k, fan_in, fan_out):
        std = (2.0 / fan_out) ** 0.5          # mode='fan_out', relu gain
        return std * jax.random.normal(k, (fan_in, fan_out), dtype=jnp.float32)

    params = {
        "w_fc": kaiming(keys[0], in_channels, A),
        "bn_gamma": jnp.ones((A,), jnp.float32),
        "bn_beta": jnp.zeros((A,), jnp.float32),
        "bn_mean": jnp.zeros((A,), jnp.float32),
        "bn_var": jnp.ones((A,), jnp.float32),
        "w_channel": kaiming(keys[1], A, in_channels),
        "b_channel": jnp.zeros((in_channels,), jnp.float32),
        "w_filter": kaiming(keys[2], A, out_channels),
        "b_filter": jnp.zeros((out_channels,), jnp.float32),
        "w_spatial": kaiming(keys[3], A, KK),
        "b_spatial": jnp.zeros((KK,), jnp.float32),
        "w_kernel": kaiming(keys[4], A, kernel_num),
        "b_kernel": jnp.zeros((kernel_num,), jnp.float32),
    }
    return params, A


def _reference(x, params, kernel_size, kernel_num, temperature, bn_eps=1e-5):
    B, C_in, H, W = x.shape
    pooled = jnp.mean(x, axis=(2, 3))                       # (B, C_in)
    h = pooled @ params["w_fc"]
    scale = params["bn_gamma"] / jnp.sqrt(params["bn_var"] + bn_eps)
    h = h * scale + (params["bn_beta"] - params["bn_mean"] * scale)
    h = jnp.maximum(h, 0.0)
    ch = jax.nn.sigmoid((h @ params["w_channel"] + params["b_channel"]) / temperature)
    fl = jax.nn.sigmoid((h @ params["w_filter"] + params["b_filter"]) / temperature)
    sp = jax.nn.sigmoid((h @ params["w_spatial"] + params["b_spatial"]) / temperature)
    kn = jax.nn.softmax((h @ params["w_kernel"] + params["b_kernel"]) / temperature,
                        axis=-1)
    return (ch.reshape(B, -1, 1, 1), fl.reshape(B, -1, 1, 1),
            sp.reshape(B, 1, 1, 1, kernel_size, kernel_size),
            kn.reshape(B, -1, 1, 1, 1, 1))


if __name__ == "__main__":
    def _check(B, C_IN, C_OUT, H, W, K_SIZE, K_NUM, TEMP):
        key = jax.random.PRNGKey(0)
        kx, kp = jax.random.split(key)
        x = jax.random.normal(kx, (B, C_IN, H, W), dtype=jnp.float32)
        params, _A = _make_params(kp, C_IN, C_OUT, K_SIZE, K_NUM)

        outs = odconv_attention(x, params, kernel_size=K_SIZE, kernel_num=K_NUM,
                                temperature=TEMP)
        outs = jax.block_until_ready(outs)

        refs = _reference(x, params, K_SIZE, K_NUM, TEMP)
        for o, r in zip(outs, refs):
            assert o.shape == r.shape, (o.shape, r.shape)
            err = float(jnp.max(jnp.abs(o - r)))
            assert err < 1e-4, err

    # Small config consistent with the module: Attention(16, 32, kernel_size=3,
    # kernel_num=4) -> attention_channels = max(int(16*0.0625), 16) = 16.
    _check(2, 16, 32, 8, 8, 3, 4, 1.0)
    # Exercise the in-kernel spatial mask (HW=169, thw=128 -> partial last block)
    # and a partial batch block (B=10 with tb=8), plus temperature != 1.
    _check(10, 16, 24, 13, 13, 3, 4, 2.0)

    print("KERNEL_OK")
</pallas_src>

<mosaic_0001>
module attributes {stable_mosaic.version = 11 : i64} {
  func.func @_attention_kernel(%arg0: i32, %arg1: i32, %arg2: memref<2x16x64xf32, #tpu.memory_space<vmem>>, %arg3: memref<16x16xf32, #tpu.memory_space<vmem>>, %arg4: memref<1x16xf32, #tpu.memory_space<vmem>>, %arg5: memref<16x128xf32, #tpu.memory_space<vmem>>, %arg6: memref<1x128xf32, #tpu.memory_space<vmem>>, %arg7: memref<2x128xf32, #tpu.memory_space<vmem>>, %arg8: memref<2x16x64xf32, #tpu.memory_space<vmem>>) attributes {dimension_semantics = [#tpu.dimension_semantics<parallel>, #tpu.dimension_semantics<arbitrary>], iteration_bounds = array<i64: 1, 1>, scalar_prefetch = 0 : i64, scratch_operands = 1 : i64, tpu.core_type = #tpu.core_type<tc>, window_params = [{transform_indices = @transform_0, window_bounds = array<i64: 2, 16, 64>}, {pipeline_mode = #tpu.pipeline_mode<synchronous>, transform_indices = @transform_1, window_bounds = array<i64: 16, 16>}, {pipeline_mode = #tpu.pipeline_mode<synchronous>, transform_indices = @transform_2, window_bounds = array<i64: 1, 16>}, {pipeline_mode = #tpu.pipeline_mode<synchronous>, transform_indices = @transform_3, window_bounds = array<i64: 16, 128>}, {pipeline_mode = #tpu.pipeline_mode<synchronous>, transform_indices = @transform_4, window_bounds = array<i64: 1, 128>}, {transform_indices = @transform_5, window_bounds = array<i64: 2, 128>}]} {
    %c0_i32 = arith.constant 0 : i32
    %0 = arith.cmpi eq, %arg1, %c0_i32 : i32
    %1 = arith.extui %0 : i1 to i32
    %c0_i32_0 = arith.constant 0 : i32
    %2 = arith.cmpi ne, %1, %c0_i32_0 : i32
    scf.if %2 {
      %cst = arith.constant 0.000000e+00 : f32
      %10 = vector.broadcast %cst : f32 to vector<2x16x64xf32>
      %c0_11 = arith.constant 0 : index
      %c0_12 = arith.constant 0 : index
      %c0_13 = arith.constant 0 : index
      %11 = vector.load %arg8[%c0_11, %c0_12, %c0_13] : memref<2x16x64xf32, #tpu.memory_space<vmem>>, vector<2x16x64xf32>
      tpu.vector_store %arg8[%c0_11, %c0_12, %c0_13], %10 {strides = array<i32>} : memref<2x16x64xf32, #tpu.memory_space<vmem>>, vector<2x16x64xf32>,
    } else {
    }
    %c0 = arith.constant 0 : index
    %c0_1 = arith.constant 0 : index
    %c0_2 = arith.constant 0 : index
    %3 = vector.load %arg8[%c0, %c0_1, %c0_2] : memref<2x16x64xf32, #tpu.memory_space<vmem>>, vector<2x16x64xf32>
    %c0_3 = arith.constant 0 : index
    %c0_4 = arith.constant 0 : index
    %c0_5 = arith.constant 0 : index
    %4 = vector.load %arg2[%c0_3, %c0_4, %c0_5] : memref<2x16x64xf32, #tpu.memory_space<vmem>>, vector<2x16x64xf32>
    %5 = arith.addf %3, %4 : vector<2x16x64xf32>
    %c0_6 = arith.constant 0 : index
    %c0_7 = arith.constant 0 : index
    %c0_8 = arith.constant 0 : index
    %6 = vector.load %arg8[%c0_6, %c0_7, %c0_8] : memref<2x16x64xf32, #tpu.memory_space<vmem>>, vector<2x16x64xf32>
    tpu.vector_store %arg8[%c0_6, %c0_7, %c0_8], %5 {strides = array<i32>} : memref<2x16x64xf32, #tpu.memory_space<vmem>>, vector<2x16x64xf32>,
    %c0_i32_9 = arith.constant 0 : i32
    %7 = arith.cmpi eq, %arg1, %c0_i32_9 : i32
    %8 = arith.extui %7 : i1 to i32
    %c0_i32_10 = arith.constant 0 : i32
    %9 = arith.cmpi ne, %8, %c0_i32_10 : i32
    scf.if %9 {
      %c0_11 = arith.constant 0 : index
      %c0_12 = arith.constant 0 : index
      %c0_13 = arith.constant 0 : index
      %10 = vector.load %arg8[%c0_11, %c0_12, %c0_13] : memref<2x16x64xf32, #tpu.memory_space<vmem>>, vector<2x16x64xf32>
      %cst = arith.constant dense<0.000000e+00> : vector<2x16xf32>
      %11 = vector.multi_reduction <add>, %10, %cst [2] : vector<2x16x64xf32> to vector<2x16xf32>
      %c0_14 = arith.constant 0 : index
      %c0_15 = arith.constant 0 : index
      %12 = vector.load %arg3[%c0_14, %c0_15] : memref<16x16xf32, #tpu.memory_space<vmem>>, vector<16x16xf32>
      %cst_16 = arith.constant dense<0.000000e+00> : vector<2x16xf32>
      %13 = tpu.matmul %11, %12, %cst_16 {dimension_numbers = #tpu.dot_dimension_numbers<[1], [0], [0], [1], [0, 0, 1, 1], [], []>} : vector<2x16xf32>, vector<16x16xf32>, vector<2x16xf32> -> vector<2x16xf32>
      %c0_17 = arith.constant 0 : index
      %c0_18 = arith.constant 0 : index
      %14 = vector.load %arg4[%c0_17, %c0_18] : memref<1x16xf32, #tpu.memory_space<vmem>>, vector<1x16xf32>
      %15 = vector.broadcast %14 : vector<1x16xf32> to vector<2x16xf32>
      %16 = arith.addf %13, %15 : vector<2x16xf32>
      %cst_19 = arith.constant 0.000000e+00 : f32
      %17 = vector.broadcast %cst_19 : f32 to vector<2x16xf32>
      %18 = arith.maximumf %16, %17 : vector<2x16xf32>
      %c0_20 = arith.constant 0 : index
      %c0_21 = arith.constant 0 : index
      %19 = vector.load %arg5[%c0_20, %c0_21] : memref<16x128xf32, #tpu.memory_space<vmem>>, vector<16x128xf32>
      %cst_22 = arith.constant dense<0.000000e+00> : vector<2x128xf32>
      %20 = tpu.matmul %18, %19, %cst_22 {dimension_numbers = #tpu.dot_dimension_numbers<[1], [0], [0], [1], [0, 0, 1, 1], [], []>} : vector<2x16xf32>, vector<16x128xf32>, vector<2x128xf32> -> vector<2x128xf32>
      %c0_23 = arith.constant 0 : index
      %c0_24 = arith.constant 0 : index
      %21 = vector.load %arg6[%c0_23, %c0_24] : memref<1x128xf32, #tpu.memory_space<vmem>>, vector<1x128xf32>
      %22 = vector.broadcast %21 : vector<1x128xf32> to vector<2x128xf32>
      %23 = arith.addf %20, %22 : vector<2x128xf32>
      %24 = tpu.iota {dimensions = array<i32: 1>} : vector<2x128xi32>
      %c57_i32 = arith.constant 57 : i32
      %25 = vector.broadcast %c57_i32 : i32 to vector<2x128xi32>
      %26 = arith.cmpi sge, %24, %25 : vector<2x128xi32>
      %c61_i32 = arith.constant 61 : i32
      %27 = vector.broadcast %c61_i32 : i32 to vector<2x128xi32>
      %28 = arith.cmpi slt, %24, %27 : vector<2x128xi32>
      %29 = arith.andi %26, %28 : vector<2x128xi1>
      %cst_25 = arith.constant 0xFF800000 : f32
      %30 = vector.broadcast %cst_25 : f32 to vector<2x128xf32>
      %31 = arith.select %29, %23, %30 : vector<2x128xi1>, vector<2x128xf32>
      %cst_26 = arith.constant dense<0xFF800000> : vector<2xf32>
      %32 = vector.multi_reduction <maximumf>, %31, %cst_26 [1] : vector<2x128xf32> to vector<2xf32>
      %33 = vector.shape_cast %32 : vector<2xf32> to vector<2x1xf32>
      %34 = vector.broadcast %33 : vector<2x1xf32> to vector<2x128xf32>
      %35 = arith.subf %31, %34 : vector<2x128xf32>
      %36 = math.exp %35 : vector<2x128xf32>
      %cst_27 = arith.constant 0.000000e+00 : f32
      %37 = vector.broadcast %cst_27 : f32 to vector<2x128xf32>
      %38 = arith.select %29, %36, %37 : vector<2x128xi1>, vector<2x128xf32>
      %cst_28 = arith.constant dense<0.000000e+00> : vector<2xf32>
      %39 = vector.multi_reduction <add>, %38, %cst_28 [1] : vector<2x128xf32> to vector<2xf32>
      %40 = vector.shape_cast %39 : vector<2xf32> to vector<2x1xf32>
      %41 = tpu.reciprocal %40 {approx = true} : vector<2x1xf32> -> vector<2x1xf32>
      %42 = arith.mulf %40, %41 : vector<2x1xf32>
      %cst_29 = arith.constant 2.000000e+00 : f32
      %43 = vector.broadcast %cst_29 : f32 to vector<2x1xf32>
      %44 = arith.subf %43, %42 : vector<2x1xf32>
      %45 = arith.mulf %41, %44 : vector<2x1xf32>
      %46 = vector.broadcast %45 : vector<2x1xf32> to vector<2x128xf32>
      %47 = arith.mulf %38, %46 : vector<2x128xf32>
      %48 = arith.negf %23 : vector<2x128xf32>
      %49 = math.exp %48 : vector<2x128xf32>
      %cst_30 = arith.constant 1.000000e+00 : f32
      %50 = vector.broadcast %cst_30 : f32 to vector<2x128xf32>
      %51 = arith.addf %50, %49 : vector<2x128xf32>
      %52 = arith.divf %50, %51 : vector<2x128xf32>
      %53 = arith.select %29, %47, %52 : vector<2x128xi1>, vector<2x128xf32>
      %c0_31 = arith.constant 0 : index
      %c0_32 = arith.constant 0 : index
      %54 = vector.load %arg7[%c0_31, %c0_32] : memref<2x128xf32, #tpu.memory_space<vmem>>, vector<2x128xf32>
      tpu.vector_store %arg7[%c0_31, %c0_32], %53 {strides = array<i32>} : memref<2x128xf32, #tpu.memory_space<vmem>>, vector<2x128xf32>,
    } else {
    }
    return
  }
  func.func @transform_0(%arg0: i32, %arg1: i32) -> (i32, i32, i32) {
    %c0_i32 = arith.constant 0 : i32
    %c0_i32_0 = arith.constant 0 : i32
    return %arg0, %c0_i32, %arg1 : i32, i32, i32
  }
  func.func @transform_1(%arg0: i32, %arg1: i32) -> (i32, i32) {
    %c0_i32 = arith.constant 0 : i32
    %c0_i32_0 = arith.constant 0 : i32
    %c0_i32_1 = arith.constant 0 : i32
    return %c0_i32, %c0_i32_0 : i32, i32
  }
  func.func @transform_2(%arg0: i32, %arg1: i32) -> (i32, i32) {
    %c0_i32 = arith.constant 0 : i32
    %c0_i32_0 = arith.constant 0 : i32
    %c0_i32_1 = arith.constant 0 : i32
    return %c0_i32, %c0_i32_0 : i32, i32
  }
  func.func @transform_3(%arg0: i32, %arg1: i32) -> (i32, i32) {
    %c0_i32 = arith.constant 0 : i32
    %c0_i32_0 = arith.constant 0 : i32
    %c0_i32_1 = arith.constant 0 : i32
    return %c0_i32, %c0_i32_0 : i32, i32
  }
  func.func @transform_4(%arg0: i32, %arg1: i32) -> (i32, i32) {
    %c0_i32 = arith.constant 0 : i32
    %c0_i32_0 = arith.constant 0 : i32
    %c0_i32_1 = arith.constant 0 : i32
    return %c0_i32, %c0_i32_0 : i32, i32
  }
  func.func @transform_5(%arg0: i32, %arg1: i32) -> (i32, i32) {
    %c0_i32 = arith.constant 0 : i32
    %c0_i32_0 = arith.constant 0 : i32
    return %arg0, %c0_i32 : i32, i32
  }
}

</mosaic_0001>

<bundles_post_ra>
// kernel: tpu_custom_call.1
= control target key start
LH: loop header
LB: loop body
LE: loop exit
PB: predicated region body
PF: predicated region fallthrough
CT: control target
= control target key end

     0   :  { %10 = vsyncpa [#allocation4], 0  ;;  %s617_s0 = inlined_call_operand.hbm [shape: f32[2,16,64], index: 0, kind: input, shape index: {}]   ;;  %s618_s1 = inlined_call_operand.hbm [shape: f32[16,16], index: 1, kind: input, shape index: {}]   ;;  %s619_s2 = inlined_call_operand.vmem [shape: f32[1,16], index: 2, kind: input, shape index: {}]   ;;  %s620_s3 = inlined_call_operand.hbm [shape: f32[16,128], index: 3, kind: input, shape index: {}]   ;;  %s621_s4 = inlined_call_operand.vmem [shape: f32[1,128], index: 4, kind: input, shape index: {}]   ;;  %s622_s5 = inlined_call_operand.hbm [shape: f32[2,128], index: 5, kind: output, shape index: {}]  }
   0x1   :  { %11 = vsyncpa [#allocation7], 0 }
   0x2   :  { %12 = vsyncpa [#allocation5], 0  ;;  %s486_s18 = smov [#allocation6]   ;;  %s487_s20 = smov [#allocation3]  }
   0x3   :  { %s30_s19 = sshll.u32 %s486_s18, 4  ;;  %s18_s21 = sshll.u32 %s487_s20, 4  ;;  %s31_s19 = int_to_ptr.vmem [resolvable:$true] %s30_s19  ;;  %s525_s21 = int_to_ptr.vmem [resolvable:$true] %s18_s21 }
   0x4   :  { %s392_s24 = scalar_lea.hbm %s618_s1, 256 }
   0x5   :  { %p393_p0 = scmp.ne.s32.totalorder %s618_s1, %s392_s24  ;;  %p396_p1 = scmp.lt.u32.totalorder %s392_s24, %s618_s1 }
   0x7   :  { %p398_p2 = pnand %p396_p1, %p393_p0 }
   0x9   :  { %401 = shalt.err (!%p398_p2)
}
   0xa   :  { %s402_s29 = scalar_lea.vmem %s31_s19, 256  ;;  %p407_p4 = scmp.lt.s32.totalorder %s31_s19, %s31_s19 }
   0xb   :  { %p403_p3 = scmp.ne.s32.totalorder %s31_s19, %s402_s29  ;;  %p408_p5 = scmp.lt.s32.totalorder %s402_s29, %s402_s29 }
   0xd   :  { %p409_p6 = por %p408_p5, %p407_p4 }
   0xf   :  { %p410_p7 = pnand %p409_p6, %p403_p3 }
  0x11   :  { %413 = shalt.err (!%p410_p7)
}
  0x12   :  { %s488_s30 = smov 128   ;;  %s489_s6 = smov 8  }
  0x13   :  { %36 = dma.hbm_to_vmem [thread:$0]  %s618_s1, 256, %s31_s19, [#allocation7], %s488_s30, %s488_s30, %s489_s6  }
  0x14   :  { %s414_s11 = scalar_lea.hbm %s617_s0, 512 }
  0x15   :  { %p415_p8 = scmp.ne.s32.totalorder %s617_s0, %s414_s11  ;;  %p418_p9 = scmp.lt.u32.totalorder %s414_s11, %s617_s0 }
  0x17   :  { %p420_p10 = pnand %p418_p9, %p415_p8 }
  0x19   :  { %423 = shalt.err (!%p420_p10)
}
  0x1a   :  { %s424_s16 = scalar_lea.vmem %s525_s21, 512  ;;  %p429_p12 = scmp.lt.s32.totalorder %s525_s21, %s525_s21 }
  0x1b   :  { %p425_p11 = scmp.ne.s32.totalorder %s525_s21, %s424_s16  ;;  %p430_p13 = scmp.lt.s32.totalorder %s424_s16, %s424_s16 }
  0x1d   :  { %p431_p0 = por %p430_p13, %p429_p12 }
  0x1f   :  { %p432_p1 = pnand %p431_p0, %p425_p11 }
  0x21   :  { %435 = shalt.err (!%p432_p1)
}
  0x22   :  { %24 = dma.hbm_to_vmem [thread:$0]  %s617_s0, 512, %s525_s21, [#allocation4], %s488_s30, %s488_s30, %s489_s6  }
  0x23   :  { %s490_s18 = smov [#allocation8]   ;;  %s436_s23 = scalar_lea.hbm %s620_s3, 256 }
  0x24   :  { %s44_s19 = sshll.u32 %s490_s18, 4  ;;  %p437_p2 = scmp.ne.s32.totalorder %s620_s3, %s436_s23  ;;  %s45_s19 = int_to_ptr.vmem [resolvable:$true] %s44_s19 }
  0x25   :  { %p440_p3 = scmp.lt.u32.totalorder %s436_s23, %s620_s3 }
  0x27   :  { %p442_p4 = pnand %p440_p3, %p437_p2 }
  0x29   :  { %445 = shalt.err (!%p442_p4)
}
  0x2a   :  { %s446_s28 = scalar_lea.vmem %s45_s19, 256  ;;  %p451_p6 = scmp.lt.s32.totalorder %s45_s19, %s45_s19 }
  0x2b   :  { %p447_p5 = scmp.ne.s32.totalorder %s45_s19, %s446_s28  ;;  %p452_p7 = scmp.lt.s32.totalorder %s446_s28, %s446_s28 }
  0x2d   :  { %p453_p8 = por %p452_p7, %p451_p6 }
  0x2f   :  { %p454_p9 = pnand %p453_p8, %p447_p5 }
  0x31   :  { %457 = shalt.err (!%p454_p9)
}
  0x32   :  { %50 = dma.hbm_to_vmem [thread:$0]  %s620_s3, 256, %s45_s19, [#allocation7], %s488_s30, %s488_s30, %s489_s6  }
  0x33   :  { %480 = dma.done.wait [#allocation4], 512  }
  0x34   :  { %481 = vsyncadd [#allocation4], 4294966784 }
  0x35   :  { %482 = dma.done.wait [#allocation7], 512  }
  0x36   :  { %483 = vsyncadd [#allocation7], 4294966784  ;;  %vm66_vm0 = vcmask 523264   ;;  %v491_v0 = vmov 0.0   ;;  %v77_v1 = vld [vmem:[#allocation3 + $0x10] sm:$0xff]  ;;  %v75_v2 = vld [vmem:[#allocation3] sm:$0xff]  ;;  %v120_v25 = vlaneseq }
  0x37   :  { %69 = vst.msk [vmem:[#allocation2 + $0x10] sm:$0xff] %vm66_vm0, %v491_v0  ;;  %67 = vst.msk [vmem:[#allocation2] sm:$0xff] %vm66_vm0, %v491_v0  ;;  %v78_v3 = vld [vmem:[#allocation3 + $0x18] sm:$0xff]  ;;  %v76_v11 = vld [vmem:[#allocation3 + $0x8] sm:$0xff]  ;;  %v492_v24 = vmov 0.0|0.0   ;;  %vm493_vm1 = vmmov 0  }
  0x38   :  { %68 = vst.msk [vmem:[#allocation2 + $0x8] sm:$0xff] %vm66_vm0, %v491_v0  ;;  %70 = vst.msk [vmem:[#allocation2 + $0x18] sm:$0xff] %vm66_vm0, %v491_v0  ;;  %v107_v21 = vld [vmem:[#allocation6] sm:$0xff]  ;;  %v108_v22 = vld [vmem:[#allocation6 + $0x8] sm:$0xff]  ;;  %369 = vmatprep.subr.bf16.mxu0 %v492_v24  ;;  %372 = vmatprep.subr.bf16.mxu1 %v492_v24  ;;  %v121_v26 = vand.u32 127, %v120_v25  ;;  %v123_v27 = vshrl.u32 %v120_v25, 7 }
  0x39   :  { %v370_v23 = vpack.c.bf16 %v108_v22, %v107_v21  ;;  %359 = vmatprep.mubr.msk.f32.mxu0 %vm493_vm1, %v491_v0  ;;  %366 = vmatprep.mubr.msk.f32.mxu1 %vm493_vm1, %v491_v0  ;;  %vm131_vm2 = vcmask 130112   ;;  %vm142_vm3 = vcmask 1041409   ;;  %vm144_vm4 = vcmask 130048   ;;  %v218_v42 = vld [vmem:[#allocation8] sm:$0xff]  ;;  %v219_v43 = vld [vmem:[#allocation8 + $0x8] sm:$0xff] }
  0x3a   :  { %v126_v28 = vadd.s32 4294967288, %v121_v26  ;;  %v124_v31 = vsub.s32 %v121_v26, %v123_v27  ;;  %v373_v44 = vpack.c.bf16 %v219_v43, %v218_v42  ;;  %v344_v45 = vld [vmem:[%s619_s2] ss:$0 sm:$0xff]  ;;  %vm300_vm5 = vcmp.ge.s32.totalorder %v121_v26, 57  ;;  %s494_s2 = smov [#allocation9]  }
  0x3b   :  { %371 = vmatpush3.bf16.msra.mxu0 %v370_v23  ;;  %vm301_vm6 = vcmp.lt.s32.totalorder %v121_v26, 61  ;;  %v346_v50 = vld [vmem:[%s621_s4] ss:$0 sm:$0xff]  ;;  %vm304_vm8 = vcmask 1041408   ;;  %s334_s4 = sshll.u32 %s494_s2, 4  ;;  %s335_s4 = int_to_ptr.vmem [resolvable:$true] %s334_s4 }
  0x3c   :  { %v129_v32 = vsub.s32 %v126_v28, %v123_v27  ;;  %374 = vmatpush3.bf16.msra.mxu1 %v373_v44  ;;  %vm595_vm7 = vmand %vm300_vm5, %vm301_vm6  ;;  %s458_s7 = scalar_lea.vmem %s335_s4, 32  ;;  %p463_p11 = scmp.lt.s32.totalorder %s335_s4, %s335_s4 }
  0x3d   :  { %p459_p10 = scmp.ne.s32.totalorder %s335_s4, %s458_s7  ;;  %p464_p12 = scmp.lt.s32.totalorder %s458_s7, %s458_s7 }
  0x3e   :  { %v73_v4 = vld [vmem:[#allocation2 + $0x10] sm:$0xff]  ;;  %v71_v5 = vld [vmem:[#allocation2] sm:$0xff] }
  0x3f   :  { %v74_v6 = vld [vmem:[#allocation2 + $0x18] sm:$0xff]  ;;  %v81_v7 = vadd.f32 %v77_v1, %v73_v4  ;;  %v79_v8 = vadd.f32 %v75_v2, %v71_v5  ;;  %v72_v10 = vld [vmem:[#allocation2 + $0x8] sm:$0xff]  ;;  %p465_p13 = por %p464_p12, %p463_p11 }
  0x40   :  { %v82_v9 = vadd.f32 %v78_v3, %v74_v6  ;;  %v80_v12 = vadd.f32 %v76_v11, %v72_v10 }
  0x41   :  { %86 = vst.msk [vmem:[#allocation2 + $0x10] sm:$0xff] %vm66_vm0, %v81_v7  ;;  %84 = vst.msk [vmem:[#allocation2] sm:$0xff] %vm66_vm0, %v79_v8  ;;  %p466_p0 = pnand %p465_p13, %p459_p10 }
  0x42   :  { %87 = vst.msk [vmem:[#allocation2 + $0x18] sm:$0xff] %vm66_vm0, %v82_v9  ;;  %85 = vst.msk [vmem:[#allocation2 + $0x8] sm:$0xff] %vm66_vm0, %v80_v12 }
  0x48   :  { %v93_v13 = vld [vmem:[#allocation2 + $0x10] sm:$0xff]  ;;  %v91_v14 = vld [vmem:[#allocation2] sm:$0xff] }
  0x49   :  { %v94_v15 = vld [vmem:[#allocation2 + $0x18] sm:$0xff]  ;;  %v101_v16 = vsel %vm66_vm0, %v93_v13, 0.0  ;;  %v95_v17 = vsel %vm66_vm0, %v91_v14, 0.0  ;;  %v92_v18 = vld [vmem:[#allocation2 + $0x8] sm:$0xff] }
  0x4a   :  { %102 = vadd.xlane.f32.xlu1 %v101_v16  ;;  %96 = vadd.xlane.f32.xlu0 %v95_v17  ;;  %v104_v19 = vsel %vm66_vm0, %v94_v15, 0.0  ;;  %v98_v20 = vsel %vm66_vm0, %v92_v18, 0.0 }
  0x4e   :  { %105 = vadd.xlane.f32.xlu1 %v104_v19  ;;  %99 = vadd.xlane.f32.xlu0 %v98_v20 }
  0xd7   :  { %v103_v29 = vpop.xlane.xlu1 %102  ;;  %v97_v30 = vpop.xlane.xlu0 %96 }
  0xd8   :  { %v136_v35 = vrot.slane %v103_v29, %v124_v31  ;;  %v125_v36 = vrot.slane %v97_v30, %v124_v31 }
  0xdb   :  { %v106_v33 = vpop.xlane.xlu1 %105  ;;  %v100_v34 = vpop.xlane.xlu0 %99 }
  0xdc   :  { %v140_v37 = vrot.slane %v106_v33, %v129_v32  ;;  %v130_v38 = vrot.slane %v100_v34, %v129_v32 }
  0xde   :  { %v141_v39 = vsel %vm131_vm2, %v140_v37, %v136_v35  ;;  %v132_v40 = vsel %vm131_vm2, %v130_v38, %v125_v36 }
  0xdf   :  { %v143_v41 = vsel %vm142_vm3, %v141_v39, %v132_v40 }
  0xe0   :  { %360 = vmatmul.mubr.msk.f32.vlgmr.msra.gmra.mrb[0].mxu0 %vm144_vm4, %v143_v41 }
 0x1b3   :  { %v213_v46 = vpop.f32.mrb[0].mxu0 }
 0x1b4   :  { %v214_v47 = vadd.f32 %v344_v45, %v213_v46  ;;  %v361_v48 = vpop.f32.mrb[1].mxu0 }
 0x1b6   :  { %v217_v49 = vmax.f32 %v214_v47, 0.0 }
 0x1b8   :  { %367 = vmatmul.mubr.msk.f32.vlgmr.msra.gmra.mrb[0].mxu1 %vm144_vm4, %v217_v49 }
 0x28b   :  { %v296_v51 = vpop.f32.mrb[0].mxu1 }
 0x28c   :  { %v297_v53 = vadd.f32 %v346_v50, %v296_v51  ;;  %v368_v54 = vpop.f32.mrb[1].mxu1 }
 0x28e   :  { %v303_v55 = vsel %vm595_vm7, %v297_v53, -inf  ;;  %v348_v63 = vmul.f32 -1.442695, %v297_v53 }
 0x28f   :  { %v305_v56 = vsel %vm304_vm8, %v303_v55, -inf }
 0x290   :  { %306 = vmax.xlane.f32.xlu0 %v305_v56 }
 0x31d   :  { %v307_v57 = vpop.xlane.xlu0 %306 }
 0x31e   :  { %v308_v58 = vsub.f32 %v303_v55, %v307_v57 }
 0x320   :  { %v309_v59 = vmul.f32 1.442695, %v308_v58 }
 0x322   :  { %384 = vpow2.f32 %v309_v59 }
 0x323   :  { %386 = vpow2.f32 %v348_v63 }
 0x32c   :  { %v385_v60 = vpop.eup %384 }
 0x32d   :  { %v311_v61 = vsel %vm595_vm7, %v385_v60, 0.0  ;;  %v387_v1 = vpop.eup %386 }
 0x32e   :  { %v312_v62 = vsel %vm304_vm8, %v311_v61, 0.0  ;;  %v323_v2 = vadd.f32 1.0, %v387_v1 }
 0x32f   :  { %313 = vadd.xlane.f32.xlu1 %v312_v62 }
 0x3bc   :  { %v314_v0 = vpop.xlane.xlu1 %313 }
 0x3bd   :  { %388 = vrcp.f32 %v314_v0 }
 0x3be   :  { %390 = vrcp.f32 %v323_v2 }
 0x3c7   :  { %v389_v3 = vpop.eup %388 }
 0x3c8   :  { %v316_v4 = vmul.f32 %v389_v3, %v314_v0  ;;  %v391_v8 = vpop.eup %390 }
 0x3ca   :  { %v317_v5 = vsub.f32 2.0, %v316_v4 }
 0x3cc   :  { %v318_v6 = vmul.f32 %v389_v3, %v317_v5 }
 0x3ce   :  { %v319_v7 = vmul.f32 %v318_v6, %v311_v61 }
 0x3d0   :  { %v326_v9 = vsel %vm595_vm7, %v319_v7, %v391_v8 }
 0x3d1   :  { %327 = vst [vmem:[#allocation9] sm:$0x3] %v326_v9 }
 0x3d2   :  { %469 = shalt.err (!%p466_p0)
}
 0x3d3   :  { %s470_s10 = scalar_lea.hbm %s622_s5, 32 }
 0x3d4   :  { %p471_p1 = scmp.ne.s32.totalorder %s622_s5, %s470_s10  ;;  %p474_p2 = scmp.lt.u32.totalorder %s470_s10, %s622_s5 }
 0x3d6   :  { %p476_p3 = pnand %p474_p2, %p471_p1 }
 0x3d8   :  { %479 = shalt.err (!%p476_p3)
}
 0x3d9   :  { %337 = dma.vmem_to_hbm [thread:$0]  %s335_s4, 32, %s622_s5, [#allocation5]  }
 0x3da   :  { %484 = dma.done.wait [#allocation5], 32  }
 0x3db   :  { %485 = vsyncadd [#allocation5], 4294967264 }
 0x3dc   :  { %341 = vsyncpa [#allocation4], 1 }
 0x3dd   :  { %342 = vsyncpa [#allocation7], 1 }
 0x3de   :  { %343 = vsyncpa [#allocation5], 1 }

</bundles_post_ra>
